<compile_context>
chip_gen: v7x
topology: tpu7x:2x2x1
jax: 0.10.0
libtpu: 0.0.40
codegen_flags: <defaults>
</compile_context>

<pallas_src>
import jax
import jax.numpy as jnp
from jax.experimental import pallas as pl
from jax.experimental.pallas import tpu as pltpu


def _eltwise_kernel(x1_ref, x2_ref, add_ref, sub_ref, mul_ref, div_ref, cmp_ref):
    a = x1_ref[...]
    b = x2_ref[...]
    add_ref[...] = a + b
    sub_ref[...] = a - b
    mul_ref[...] = a * b
    # NOTE: in partial trailing blocks the out-of-bounds lanes of `a`/`b` hold
    # undefined (stale VMEM) data; the divide may produce inf/nan there, but
    # the corresponding OOB stores are dropped by Pallas so results are
    # unaffected.  Do NOT reuse those lanes for any cross-lane reduction.
    div_ref[...] = a / (b + 1e-08)          # matches PyTorch: x1 / (x2 + 1e-08)
    # uint8 mask (bool refs are not reliably supported by Mosaic); viewed as
    # bool in the wrapper with a single cheap 1-byte pass.
    cmp_ref[...] = (a > b).astype(jnp.uint8)


# Widest useful lane first; 1024 is already fully lane-dense on the store path.
_LANE_CANDIDATES = (1024, 512, 256, 128)


def _round_down(x, m):
    return (x // m) * m


def _round_up(x, m):
    return -(-x // m) * m


def _vmem_plan():
    """(vmem_limit_bytes, tile_byte_budget) sized per generation."""
    try:
        cap = int(pltpu.get_tpu_info().vmem_capacity_bytes)
    except Exception:
        cap = 64 * 1024 * 1024                      # conservative: v7x physical VMEM
    vmem_limit = min(cap // 2, 64 * 1024 * 1024)    # 32 MiB on v7x, 64 MiB on v5e/v6e
    budget = (vmem_limit * 3) // 4                  # headroom under the scoped limit
    return vmem_limit, budget


def pt_module_forward(x1, x2):
    assert x1.shape == x2.shape and x1.dtype == x2.dtype
    orig_shape = x1.shape
    dtype = x1.dtype
    itemsize = jnp.dtype(dtype).itemsize
    n = x1.size

    vmem_limit, budget = _vmem_plan()

    lane = None
    for cand in _LANE_CANDIDATES:
        if n % cand == 0:
            lane = cand
            break

    if lane is not None:
        # -------- aligned path: (rows, lane) slab, row-tiled --------
        rows = n // lane
        # bytes per row of pipeline state (double buffered):
        per_row = 2 * (6 * itemsize + 1) * lane
        block_rows_budget = max(32, _round_down(budget // per_row, 32))
        if block_rows_budget >= rows:
            # whole slab fits one tile; still give each v7x TensorCore a tile
            steps = 2 if rows >= 64 else 1
        else:
            steps = pl.cdiv(rows, block_rows_budget)
        # balanced tiles, rounded to 32 rows (native (32,128) tile of the u8 out)
        block_rows = min(rows, _round_up(pl.cdiv(rows, steps), 32))
        grid = (pl.cdiv(rows, block_rows),)
        block_shape = (block_rows, lane)
        index_map = lambda i: (i, 0)
        slab_shape = (rows, lane)
    else:
        # -------- ragged fallback: (1, n) slab, lane-tiled, no pad / no slice --------
        # VMEM per element here includes the 8x sublane padding of a (1, C)
        # block (u8 pads to 32 sublanes), double buffered.
        per_elem = 2 * (8 * 6 * itemsize + 32)
        block_cols = max(1024, _round_down(budget // per_elem, 128))
        block_cols = min(block_cols, _round_up(n, 128))
        grid = (pl.cdiv(n, block_cols),)
        block_shape = (1, block_cols)
        index_map = lambda i: (0, i)
        slab_shape = (1, n)

    s1 = x1.reshape(slab_shape)                     # pure reshape, no copy
    s2 = x2.reshape(slab_shape)

    spec = pl.BlockSpec(block_shape, index_map)
    out_shapes = (
        jax.ShapeDtypeStruct(slab_shape, dtype),        # addition
        jax.ShapeDtypeStruct(slab_shape, dtype),        # subtraction
        jax.ShapeDtypeStruct(slab_shape, dtype),        # multiplication
        jax.ShapeDtypeStruct(slab_shape, dtype),        # division
        jax.ShapeDtypeStruct(slab_shape, jnp.uint8),    # comparison mask
    )

    add_s, sub_s, mul_s, div_s, cmp_s = pl.pallas_call(
        _eltwise_kernel,
        out_shape=out_shapes,
        grid=grid,
        in_specs=[spec, spec],
        out_specs=(spec, spec, spec, spec, spec),
        compiler_params=pltpu.CompilerParams(
            dimension_semantics=("parallel",),          # shards tiles across v7x's 2 TCs
            vmem_limit_bytes=int(vmem_limit),
        ),
        cost_estimate=pl.CostEstimate(
            flops=5 * n,
            transcendentals=0,
            bytes_accessed=n * (6 * itemsize + 1),
        ),
    )(s1, s2)

    def from_slab(s):
        return s.reshape(orig_shape)                    # pure reshape, no copy

    addition = from_slab(add_s)
    subtraction = from_slab(sub_s)
    multiplication = from_slab(mul_s)
    division = from_slab(div_s)
    # single 1-byte elementwise pass to match PyTorch's bool dtype
    comparison = from_slab(cmp_s).astype(jnp.bool_)
    return addition, subtraction, multiplication, division, comparison


def _check(x1, x2):
    outs = pt_module_forward(x1, x2)
    outs = jax.block_until_ready(outs)
    ref = (
        x1 + x2,
        x1 - x2,
        x1 * x2,
        x1 / (x2 + 1e-08),
        x1 > x2,
    )
    for got, want in zip(outs, ref):
        assert got.shape == want.shape and got.dtype == want.dtype
        if got.dtype == jnp.bool_:
            assert bool(jnp.all(got == want))
        else:
            assert bool(jnp.allclose(got, want, rtol=1e-6, atol=1e-6))


if __name__ == "__main__":
    key = jax.random.PRNGKey(0)
    k1, k2, k3, k4 = jax.random.split(key, 4)

    # Main shape implied by the module's example usage.
    shape = (2, 4, 16, 16)
    x1 = jax.random.normal(k1, shape, dtype=jnp.float32)
    x2 = jax.random.normal(k2, shape, dtype=jnp.float32)
    _check(x1, x2)

    # Second aligned shape exercising a narrower lane selection (n = 1920 -> lane 128).
    shape2 = (3, 5, 8, 16)
    y1 = jax.random.normal(k3, shape2, dtype=jnp.float32)
    y2 = jax.random.normal(k4, shape2, dtype=jnp.float32)
    _check(y1, y2)

    print("KERNEL_OK")
</pallas_src>

<mosaic_0001>
module attributes {stable_mosaic.version = 11 : i64} {
  func.func @_eltwise_kernel(%arg0: i32, %arg1: memref<2x1024xf32, #tpu.memory_space<vmem>>, %arg2: memref<2x1024xf32, #tpu.memory_space<vmem>>, %arg3: memref<2x1024xf32, #tpu.memory_space<vmem>>, %arg4: memref<2x1024xf32, #tpu.memory_space<vmem>>, %arg5: memref<2x1024xf32, #tpu.memory_space<vmem>>, %arg6: memref<2x1024xf32, #tpu.memory_space<vmem>>, %arg7: memref<2x1024xi8, #tpu.memory_space<vmem>>) attributes {dimension_semantics = [#tpu.dimension_semantics<parallel>], iteration_bounds = array<i64: 1>, scalar_prefetch = 0 : i64, scratch_operands = 0 : i64, tpu.core_type = #tpu.core_type<tc>, window_params = [{transform_indices = @transform_0, window_bounds = array<i64: 2, 1024>}, {transform_indices = @transform_1, window_bounds = array<i64: 2, 1024>}, {transform_indices = @transform_2, window_bounds = array<i64: 2, 1024>}, {transform_indices = @transform_3, window_bounds = array<i64: 2, 1024>}, {transform_indices = @transform_4, window_bounds = array<i64: 2, 1024>}, {transform_indices = @transform_5, window_bounds = array<i64: 2, 1024>}, {transform_indices = @transform_6, window_bounds = array<i64: 2, 1024>}]} {
    %c0 = arith.constant 0 : index
    %c0_0 = arith.constant 0 : index
    %0 = vector.load %arg1[%c0, %c0_0] : memref<2x1024xf32, #tpu.memory_space<vmem>>, vector<2x1024xf32>
    %c0_1 = arith.constant 0 : index
    %c0_2 = arith.constant 0 : index
    %1 = vector.load %arg2[%c0_1, %c0_2] : memref<2x1024xf32, #tpu.memory_space<vmem>>, vector<2x1024xf32>
    %2 = arith.addf %0, %1 : vector<2x1024xf32>
    %c0_3 = arith.constant 0 : index
    %c0_4 = arith.constant 0 : index
    %3 = vector.load %arg3[%c0_3, %c0_4] : memref<2x1024xf32, #tpu.memory_space<vmem>>, vector<2x1024xf32>
    tpu.vector_store %arg3[%c0_3, %c0_4], %2 {strides = array<i32>} : memref<2x1024xf32, #tpu.memory_space<vmem>>, vector<2x1024xf32>,
    %4 = arith.subf %0, %1 : vector<2x1024xf32>
    %c0_5 = arith.constant 0 : index
    %c0_6 = arith.constant 0 : index
    %5 = vector.load %arg4[%c0_5, %c0_6] : memref<2x1024xf32, #tpu.memory_space<vmem>>, vector<2x1024xf32>
    tpu.vector_store %arg4[%c0_5, %c0_6], %4 {strides = array<i32>} : memref<2x1024xf32, #tpu.memory_space<vmem>>, vector<2x1024xf32>,
    %6 = arith.mulf %0, %1 : vector<2x1024xf32>
    %c0_7 = arith.constant 0 : index
    %c0_8 = arith.constant 0 : index
    %7 = vector.load %arg5[%c0_7, %c0_8] : memref<2x1024xf32, #tpu.memory_space<vmem>>, vector<2x1024xf32>
    tpu.vector_store %arg5[%c0_7, %c0_8], %6 {strides = array<i32>} : memref<2x1024xf32, #tpu.memory_space<vmem>>, vector<2x1024xf32>,
    %cst = arith.constant 9.99999993E-9 : f32
    %8 = vector.broadcast %cst : f32 to vector<2x1024xf32>
    %9 = arith.addf %1, %8 : vector<2x1024xf32>
    %10 = arith.divf %0, %9 : vector<2x1024xf32>
    %c0_9 = arith.constant 0 : index
    %c0_10 = arith.constant 0 : index
    %11 = vector.load %arg6[%c0_9, %c0_10] : memref<2x1024xf32, #tpu.memory_space<vmem>>, vector<2x1024xf32>
    tpu.vector_store %arg6[%c0_9, %c0_10], %10 {strides = array<i32>} : memref<2x1024xf32, #tpu.memory_space<vmem>>, vector<2x1024xf32>,
    %12 = arith.cmpf ogt, %0, %1 : vector<2x1024xf32>
    %13 = arith.extui %12 : vector<2x1024xi1> to vector<2x1024xi8>
    %c0_11 = arith.constant 0 : index
    %c0_12 = arith.constant 0 : index
    %14 = vector.load %arg7[%c0_11, %c0_12] : memref<2x1024xi8, #tpu.memory_space<vmem>>, vector<2x1024xi8>
    tpu.vector_store %arg7[%c0_11, %c0_12], %13 {strides = array<i32>} : memref<2x1024xi8, #tpu.memory_space<vmem>>, vector<2x1024xi8>,
    return
  }
  func.func @transform_0(%arg0: i32) -> (i32, i32) {
    %c0_i32 = arith.constant 0 : i32
    %c0_i32_0 = arith.constant 0 : i32
    return %arg0, %c0_i32 : i32, i32
  }
  func.func @transform_1(%arg0: i32) -> (i32, i32) {
    %c0_i32 = arith.constant 0 : i32
    %c0_i32_0 = arith.constant 0 : i32
    return %arg0, %c0_i32 : i32, i32
  }
  func.func @transform_2(%arg0: i32) -> (i32, i32) {
    %c0_i32 = arith.constant 0 : i32
    %c0_i32_0 = arith.constant 0 : i32
    return %arg0, %c0_i32 : i32, i32
  }
  func.func @transform_3(%arg0: i32) -> (i32, i32) {
    %c0_i32 = arith.constant 0 : i32
    %c0_i32_0 = arith.constant 0 : i32
    return %arg0, %c0_i32 : i32, i32
  }
  func.func @transform_4(%arg0: i32) -> (i32, i32) {
    %c0_i32 = arith.constant 0 : i32
    %c0_i32_0 = arith.constant 0 : i32
    return %arg0, %c0_i32 : i32, i32
  }
  func.func @transform_5(%arg0: i32) -> (i32, i32) {
    %c0_i32 = arith.constant 0 : i32
    %c0_i32_0 = arith.constant 0 : i32
    return %arg0, %c0_i32 : i32, i32
  }
  func.func @transform_6(%arg0: i32) -> (i32, i32) {
    %c0_i32 = arith.constant 0 : i32
    %c0_i32_0 = arith.constant 0 : i32
    return %arg0, %c0_i32 : i32, i32
  }
}

</mosaic_0001>

<bundles_post_ra>
// kernel: tpu_custom_call.1
= control target key start
LH: loop header
LB: loop body
LE: loop exit
PB: predicated region body
PF: predicated region fallthrough
CT: control target
= control target key end

     0   :  { %12 = vsyncpa [#allocation3], 0  ;;  %s771_s0 = inlined_call_operand.hbm [shape: f32[2,1024], index: 0, kind: input, shape index: {}]   ;;  %s772_s1 = inlined_call_operand.hbm [shape: f32[2,1024], index: 1, kind: input, shape index: {}]   ;;  %s773_s2 = inlined_call_operand.hbm [shape: f32[2,1024], index: 2, kind: output, shape index: {0}]   ;;  %s774_s3 = inlined_call_operand.hbm [shape: f32[2,1024], index: 3, kind: output, shape index: {1}]   ;;  %s775_s4 = inlined_call_operand.hbm [shape: f32[2,1024], index: 4, kind: output, shape index: {2}]   ;;  %s776_s5 = inlined_call_operand.hbm [shape: f32[2,1024], index: 5, kind: output, shape index: {3}]   ;;  %s777_s6 = inlined_call_operand.hbm [shape: u8[2,1024], index: 6, kind: output, shape index: {4}]  }
   0x1   :  { %13 = vsyncpa [#allocation6], 0 }
   0x2   :  { %14 = vsyncpa [#allocation4], 0 }
   0x3   :  { %15 = vsyncpa [#allocation9], 0 }
   0x4   :  { %16 = vsyncpa [#allocation12], 0  ;;  %s512_s21 = smov [#allocation2]   ;;  %s513_s23 = smov [#allocation5]  }
   0x5   :  { %s23_s22 = sshll.u32 %s512_s21, 4  ;;  %s33_s24 = sshll.u32 %s513_s23, 4  ;;  %s24_s22 = int_to_ptr.vmem [resolvable:$true] %s23_s22  ;;  %s34_s24 = int_to_ptr.vmem [resolvable:$true] %s33_s24 }
   0x6   :  { %s348_s27 = scalar_lea.hbm %s771_s0, 256 }
   0x7   :  { %p349_p0 = scmp.ne.s32.totalorder %s771_s0, %s348_s27  ;;  %p352_p1 = scmp.lt.u32.totalorder %s348_s27, %s771_s0 }
   0x9   :  { %p354_p2 = pnand %p352_p1, %p349_p0 }
   0xb   :  { %357 = shalt.err (!%p354_p2)
}
   0xc   :  { %s358_s8 = scalar_lea.vmem %s24_s22, 256  ;;  %p363_p4 = scmp.lt.s32.totalorder %s24_s22, %s24_s22 }
   0xd   :  { %p359_p3 = scmp.ne.s32.totalorder %s24_s22, %s358_s8  ;;  %p364_p5 = scmp.lt.s32.totalorder %s358_s8, %s358_s8 }
   0xf   :  { %p365_p6 = por %p364_p5, %p363_p4 }
  0x11   :  { %p366_p7 = pnand %p365_p6, %p359_p3 }
  0x13   :  { %369 = shalt.err (!%p366_p7)
}
  0x14   :  { %26 = dma.hbm_to_vmem [thread:$0]  %s771_s0, 256, %s24_s22, [#allocation3]  }
  0x15   :  { %s370_s13 = scalar_lea.hbm %s772_s1, 256 }
  0x16   :  { %p371_p8 = scmp.ne.s32.totalorder %s772_s1, %s370_s13  ;;  %p374_p9 = scmp.lt.u32.totalorder %s370_s13, %s772_s1 }
  0x18   :  { %p376_p10 = pnand %p374_p9, %p371_p8 }
  0x1a   :  { %379 = shalt.err (!%p376_p10)
}
  0x1b   :  { %s380_s18 = scalar_lea.vmem %s34_s24, 256  ;;  %p385_p12 = scmp.lt.s32.totalorder %s34_s24, %s34_s24 }
  0x1c   :  { %p381_p11 = scmp.ne.s32.totalorder %s34_s24, %s380_s18  ;;  %p386_p13 = scmp.lt.s32.totalorder %s380_s18, %s380_s18 }
  0x1e   :  { %p387_p0 = por %p386_p13, %p385_p12 }
  0x20   :  { %p388_p1 = pnand %p387_p0, %p381_p11 }
  0x22   :  { %391 = shalt.err (!%p388_p1)
}
  0x23   :  { %36 = dma.hbm_to_vmem [thread:$0]  %s772_s1, 256, %s34_s24, [#allocation6]  }
  0x24   :  { %502 = dma.done.wait [#allocation3], 256  }
  0x25   :  { %503 = vsyncadd [#allocation3], 4294967040 }
  0x26   :  { %504 = dma.done.wait [#allocation6], 256  }
  0x27   :  { %505 = vsyncadd [#allocation6], 4294967040  ;;  %v77_v0 = vlaneseq  ;;  %v514_v1 = vmov 1983009808   ;;  %vm230_vm0 = vcmask 1040384   ;;  %s515_s20 = smov [#allocation8]  }
  0x28   :  { %v75_v2 = vunpack.c.l.s4 %v514_v1  ;;  %vm231_vm1 = vsmask.f32 256  ;;  %s280_s21 = sshll.u32 %s515_s20, 4  ;;  %v584_v6 = vld [vmem:[#allocation2] sm:$0xff]  ;;  %v47_v7 = vld [vmem:[#allocation5] sm:$0xff]  ;;  %v588_v10 = vld [vmem:[#allocation2 + $0x8] sm:$0xff]  ;;  %s596_s21 = int_to_ptr.vmem [resolvable:$true] %s280_s21 }
  0x29   :  { %v581_v3 = vshrl.u32 %v77_v0, 7  ;;  %v516_v8 = vmov 1966171168   ;;  %vm233_vm2 = vcmask 1041409   ;;  %vm234_vm3 = vsmask.f32 1280  ;;  %p397_p3 = scmp.lt.s32.totalorder %s596_s21, %s596_s21 }
  0x2a   :  { %v76_v4 = vunpack.c.0.s8 %v75_v2  ;;  %v586_v9 = vunpack.c.l.s4 %v516_v8  ;;  %v53_v11 = vsub.f32 %v584_v6, %v47_v7  ;;  %vm69_vm4 = vcmp.gt.f32.partialorder %v584_v6, %v47_v7  ;;  %v48_v12 = vld [vmem:[#allocation5 + $0x8] sm:$0xff]  ;;  %s517_s1 = smov [#allocation7]   ;;  %s518_s23 = smov [#allocation10]  }
  0x2b   :  { %v61_v13 = vadd.f32 1e-08, %v47_v7  ;;  %v49_v14 = vadd.f32 %v47_v7, %v584_v6  ;;  %s270_s22 = sshll.u32 %s517_s1, 4  ;;  %s290_s24 = sshll.u32 %s518_s23, 4  ;;  %v519_v15 = vmov 0   ;;  %v54_v17 = vsub.f32 %v588_v10, %v48_v12  ;;  %s600_s22 = int_to_ptr.vmem [resolvable:$true] %s270_s22  ;;  %s602_s24 = int_to_ptr.vmem [resolvable:$true] %s290_s24 }
  0x2c   :  { %v79_v5 = vsub.s32 %v76_v4, %v581_v3  ;;  %v71_v16 = vsel %vm69_vm4, 1, %v519_v15  ;;  %vm70_vm5 = vcmp.gt.f32.partialorder %v588_v10, %v48_v12  ;;  %v62_v18 = vadd.f32 1e-08, %v48_v12  ;;  %55 = vst [vmem:[#allocation8] sm:$0xff] %v53_v11  ;;  %s392_s25 = scalar_lea.vmem %s596_s21, 256 }
  0x2d   :  { %v73_v19 = vcombine.high %v71_v16, %v71_v16  ;;  %v72_v21 = vsel %vm70_vm5, 1, %v519_v15  ;;  %344 = vrcp.f32 %v61_v13  ;;  %51 = vst [vmem:[#allocation7] sm:$0xff] %v49_v14  ;;  %56 = vst [vmem:[#allocation8 + $0x8] sm:$0xff] %v54_v17  ;;  %v50_v24 = vadd.f32 %v48_v12, %v588_v10  ;;  %p393_p2 = scmp.ne.s32.totalorder %s596_s21, %s392_s25  ;;  %p398_p4 = scmp.lt.s32.totalorder %s392_s25, %s392_s25 }
  0x2e   :  { %v80_v20 = vrot.slane %v71_v16, %v79_v5  ;;  %v88_v22 = vcombine.high %v72_v21, %v72_v21  ;;  %v95_v23 = vrot.slane %v72_v21, %v79_v5  ;;  %346 = vrcp.f32 %v62_v18 }
  0x2f   :  { %v87_v25 = vrot.slane %v73_v19, %v79_v5  ;;  %v57_v27 = vmul.f32 %v47_v7, %v584_v6  ;;  %v58_v28 = vmul.f32 %v48_v12, %v588_v10  ;;  %p399_p5 = por %p398_p4, %p397_p3 }
  0x30   :  { %vm604_vm6 = vcmp.ne.s32.totalorder %v80_v20, 0 }
  0x31   :  { %p400_p6 = pnand %p399_p5, %p393_p2 }
  0x33   :  { %403 = shalt.err (!%p400_p6)
}
  0x34   :  { %s404_s28 = scalar_lea.hbm %s774_s3, 256 }
  0x35   :  { %p405_p7 = scmp.ne.s32.totalorder %s774_s3, %s404_s28  ;;  %p408_p8 = scmp.lt.u32.totalorder %s404_s28, %s774_s3 }
  0x37   :  { %p410_p9 = pnand %p408_p8, %p405_p7 }
  0x39   :  { %413 = shalt.err (!%p410_p9)
}
  0x3a   :  { %283 = dma.vmem_to_hbm [thread:$0]  %s596_s21, 256, %s774_s3, [#allocation9]   ;;  %v107_v29 = vsel %vm604_vm6, 1, %v519_v15  ;;  %v102_v30 = vrot.slane %v88_v22, %v79_v5  ;;  %vm105_vm7 = vcmp.ne.s32.totalorder %v95_v23, 0  ;;  %52 = vst [vmem:[#allocation7 + $0x8] sm:$0xff] %v50_v24  ;;  %vm104_vm8 = vcmp.ne.s32.totalorder %v87_v25, 0  ;;  %vm633_vm9 = vmand %vm230_vm0, %vm231_vm1 }
  0x3b   :  { %v109_v31 = vsel %vm105_vm7, 1, %v519_v15  ;;  %59 = vst [vmem:[#allocation10] sm:$0xff] %v57_v27  ;;  %60 = vst [vmem:[#allocation10 + $0x8] sm:$0xff] %v58_v28  ;;  %s414_s11 = scalar_lea.vmem %s600_s22, 256  ;;  %p419_p11 = scmp.lt.s32.totalorder %s600_s22, %s600_s22 }
  0x3c   :  { %p415_p10 = scmp.ne.s32.totalorder %s600_s22, %s414_s11  ;;  %p420_p12 = scmp.lt.s32.totalorder %s414_s11, %s414_s11 }
  0x3e   :  { %p421_p13 = por %p420_p12, %p419_p11 }
  0x40   :  { %p422_p0 = pnand %p421_p13, %p415_p10 }
  0x42   :  { %425 = shalt.err (!%p422_p0)
}
  0x43   :  { %s426_s13 = scalar_lea.hbm %s773_s2, 256 }
  0x44   :  { %p427_p1 = scmp.ne.s32.totalorder %s773_s2, %s426_s13  ;;  %p430_p2 = scmp.lt.u32.totalorder %s426_s13, %s773_s2 }
  0x46   :  { %p432_p3 = pnand %p430_p2, %p427_p1 }
  0x48   :  { %435 = shalt.err (!%p432_p3)
}
  0x49   :  { %273 = dma.vmem_to_hbm [thread:$0]  %s600_s22, 256, %s773_s2, [#allocation4]   ;;  %v108_v33 = vsel %vm104_vm8, 1, %v519_v15  ;;  %v119_v34 = vunpack.c.0.s8 %v586_v9  ;;  %vm106_vm10 = vcmp.ne.s32.totalorder %v102_v30, 0  ;;  %vm659_vm11 = vmand %vm233_vm2, %vm234_vm3 }
  0x4a   :  { %s436_s19 = scalar_lea.vmem %s602_s24, 256  ;;  %p441_p5 = scmp.lt.s32.totalorder %s602_s24, %s602_s24 }
  0x4b   :  { %p437_p4 = scmp.ne.s32.totalorder %s602_s24, %s436_s19  ;;  %p442_p6 = scmp.lt.s32.totalorder %s436_s19, %s436_s19 }
  0x4d   :  { %p443_p7 = por %p442_p6, %p441_p5 }
  0x4f   :  { %p444_p8 = pnand %p443_p7, %p437_p4 }
  0x51   :  { %447 = shalt.err (!%p444_p8)
}
  0x52   :  { %s448_s21 = scalar_lea.hbm %s775_s4, 256 }
  0x53   :  { %p449_p9 = scmp.ne.s32.totalorder %s775_s4, %s448_s21  ;;  %p452_p10 = scmp.lt.u32.totalorder %s448_s21, %s775_s4 }
  0x55   :  { %p454_p11 = pnand %p452_p10, %p449_p9 }
  0x57   :  { %457 = shalt.err (!%p454_p11)
}
  0x58   :  { %293 = dma.vmem_to_hbm [thread:$0]  %s602_s24, 256, %s775_s4, [#allocation9]   ;;  %v111_v36 = vpack.c.b16 %v108_v33, %v107_v29  ;;  %v110_v37 = vsel %vm106_vm10, 1, %v519_v15  ;;  %vm237_vm12 = vcmask 1042434   ;;  %vm238_vm13 = vsmask.f32 2304  ;;  %vm236_vm14 = vmor %vm659_vm11, %vm633_vm9  ;;  %v345_v41 = vpop.eup %344 }
  0x59   :  { %v112_v38 = vpack.c.b16 %v110_v37, %v109_v31  ;;  %v687_v39 = vsub.s32 %v119_v34, %v581_v3  ;;  %vm239_vm15 = vmand %vm237_vm12, %vm238_vm13  ;;  %s520_s28 = smov [#allocation11]   ;;  %vm241_vm0 = vcmask 1043459   ;;  %vm242_vm1 = vsmask.f32 3328  ;;  %v347_v42 = vpop.eup %346 }
  0x5a   :  { %s300_s29 = sshll.u32 %s520_s28, 4  ;;  %v64_v43 = vmul.f32 %v345_v41, %v584_v6  ;;  %v66_v44 = vmul.f32 %v347_v42, %v588_v10  ;;  %vm692_vm3 = vmor %vm239_vm15, %vm236_vm14  ;;  %vm245_vm5 = vcmask 1044484   ;;  %vm246_vm6 = vsmask.f32 4352  ;;  %s301_s29 = int_to_ptr.vmem [resolvable:$true] %s300_s29 }
  0x5b   :  { %v113_v40 = vpack.c.b8 %v112_v38, %v111_v36  ;;  %vm697_vm4 = vmand %vm241_vm0, %vm242_vm1  ;;  %s458_s4 = scalar_lea.vmem %s301_s29, 256  ;;  %p463_p13 = scmp.lt.s32.totalorder %s301_s29, %s301_s29 }
  0x5c   :  { %67 = vst [vmem:[#allocation11] sm:$0xff] %v64_v43  ;;  %68 = vst [vmem:[#allocation11 + $0x8] sm:$0xff] %v66_v44  ;;  %p459_p12 = scmp.ne.s32.totalorder %s301_s29, %s458_s4  ;;  %p464_p0 = scmp.lt.s32.totalorder %s458_s4, %s458_s4 }
  0x5d   :  { %vm114_vm2 = vnez %v113_v40 }
  0x5e   :  { %v115_v45 = vsel %vm114_vm2, 16843009, %v519_v15  ;;  %p465_p1 = por %p464_p0, %p463_p13 }
  0x5f   :  { %v116_v47 = vcombine.high %v115_v45, %v115_v45  ;;  %v123_v48 = vrot.slane %v115_v45, %v687_v39 }
  0x60   :  { %p466_p2 = pnand %p465_p1, %p459_p12 }
  0x61   :  { %v130_v50 = vrot.slane %v116_v47, %v687_v39  ;;  %v131_v51 = vcombine.high %v123_v48, %v123_v48  ;;  %v139_v52 = vrot.slane %v123_v48, %v687_v39 }
  0x62   :  { %469 = shalt.err (!%p466_p2)
}
  0x63   :  { %s470_s7 = scalar_lea.hbm %s776_s5, 256 }
  0x64   :  { %p471_p3 = scmp.ne.s32.totalorder %s776_s5, %s470_s7  ;;  %p474_p4 = scmp.lt.u32.totalorder %s470_s7, %s776_s5 }
  0x66   :  { %p476_p5 = pnand %p474_p4, %p471_p3 }
  0x68   :  { %479 = shalt.err (!%p476_p5)
}
  0x69   :  { %303 = dma.vmem_to_hbm [thread:$0]  %s301_s29, 256, %s776_s5, [#allocation12]   ;;  %vm244_vm7 = vmor %vm697_vm4, %vm692_vm3  ;;  %vm249_vm8 = vcmask 1045509   ;;  %v132_v53 = vcombine.high %v130_v50, %v130_v50  ;;  %v146_v54 = vrot.slane %v130_v50, %v687_v39  ;;  %v153_v55 = vrot.slane %v131_v51, %v687_v39  ;;  %v261_v19 = vld [vmem:[#allocation13] sm:$0xff] }
  0x6a   :  { %v161_v56 = vcombine.high %v139_v52, %v139_v52  ;;  %vm247_vm9 = vmand %vm245_vm5, %vm246_vm6  ;;  %vm165_vm10 = vnez %v139_v52  ;;  %vm250_vm11 = vsmask.f32 5376  ;;  %vm254_vm13 = vsmask.f32 6400  ;;  %s521_s5 = smov [#allocation13]  }
  0x6b   :  { %v160_v57 = vrot.slane %v132_v53, %v687_v39  ;;  %v162_v58 = vcombine.high %v146_v54, %v146_v54  ;;  %v163_v59 = vcombine.high %v153_v55, %v153_v55  ;;  %vm166_vm14 = vnez %v153_v55  ;;  %vm731_vm1 = vmor %vm247_vm9, %vm244_vm7  ;;  %s310_s13 = sshll.u32 %s521_s5, 4  ;;  %s311_s13 = int_to_ptr.vmem [resolvable:$true] %s310_s13 }
  0x6c   :  { %vm167_vm15 = vnez %v161_v56  ;;  %vm169_vm0 = vnez %v146_v54  ;;  %v173_v60 = vsel %vm165_vm10, 16843009, %v519_v15  ;;  %v174_v61 = vsel %vm166_vm14, 16843009, %v519_v15  ;;  %vm737_vm12 = vmand %vm249_vm8, %vm250_vm11  ;;  %s480_s14 = scalar_lea.vmem %s311_s13, 128  ;;  %p485_p7 = scmp.lt.s32.totalorder %s311_s13, %s311_s13 }
  0x6d   :  { %v164_v63 = vcombine.high %v160_v57, %v160_v57  ;;  %vm168_vm2 = vnez %v163_v59  ;;  %vm170_vm5 = vnez %v160_v57  ;;  %vm171_vm6 = vnez %v162_v58  ;;  %vm252_vm4 = vmor %vm737_vm12, %vm731_vm1  ;;  %p481_p6 = scmp.ne.s32.totalorder %s311_s13, %s480_s14  ;;  %p486_p8 = scmp.lt.s32.totalorder %s480_s14, %s480_s14 }
  0x6e   :  { %v175_v1 = vsel %vm167_vm15, 16843009, %v519_v15  ;;  %v176_v2 = vsel %vm168_vm2, 16843009, %v519_v15  ;;  %v177_v3 = vsel %vm169_vm0, 16843009, %v519_v15  ;;  %v181_v4 = vcombine.low %v173_v60, %v174_v61 }
  0x6f   :  { %vm172_vm3 = vnez %v164_v63  ;;  %v178_v5 = vsel %vm170_vm5, 16843009, %v519_v15  ;;  %v179_v6 = vsel %vm171_vm6, 16843009, %v519_v15  ;;  %v182_v7 = vcombine.low %v175_v1, %v176_v2  ;;  %p487_p9 = por %p486_p8, %p485_p7 }
  0x70   :  { %v180_v8 = vsel %vm172_vm3, 16843009, %v519_v15  ;;  %v183_v9 = vcombine.low %v177_v3, %v178_v5  ;;  %v191_v10 = vrot.slane %v181_v4, %v687_v39  ;;  %vm792_vm7 = vcmask 1046534  }
  0x71   :  { %v184_v11 = vcombine.low %v179_v6, %v180_v8  ;;  %v198_v12 = vrot.slane %v182_v7, %v687_v39  ;;  %vm255_vm8 = vmand %vm792_vm7, %vm254_vm13  ;;  %vm257_vm9 = vcmask 1047559   ;;  %vm258_vm10 = vsmask.f32 7424  ;;  %p488_p10 = pnand %p487_p9, %p481_p6 }
  0x72   :  { %v205_v13 = vrot.slane %v183_v9, %v687_v39  ;;  %vm256_vm11 = vmor %vm255_vm8, %vm252_vm4 }
  0x73   :  { %v212_v14 = vrot.slane %v184_v11, %v687_v39  ;;  %v213_v15 = vcombine.low %v191_v10, %v198_v12  ;;  %vm259_vm14 = vmand %vm257_vm9, %vm258_vm10 }
  0x74   :  { %vm260_vm12 = vmor %vm259_vm14, %vm256_vm11 }
  0x75   :  { %v214_v16 = vcombine.low %v205_v13, %v212_v14  ;;  %v221_v17 = vrot.slane %v213_v15, %v687_v39 }
  0x77   :  { %v228_v18 = vrot.slane %v214_v16, %v687_v39 }
  0x79   :  { %v229_v20 = vcombine.low %v221_v17, %v228_v18 }
  0x7b   :  { %v262_v21 = vsel %vm260_vm12, %v229_v20, %v261_v19 }
  0x7c   :  { %263 = vst [vmem:[#allocation13] sm:$0xff] %v262_v21 }
  0x7d   :  { %491 = shalt.err (!%p488_p10)
}
  0x7e   :  { %s492_s17 = scalar_lea.hbm %s777_s6, 128 }
  0x7f   :  { %p493_p11 = scmp.ne.s32.totalorder %s777_s6, %s492_s17  ;;  %p496_p12 = scmp.lt.u32.totalorder %s492_s17, %s777_s6 }
  0x81   :  { %p498_p13 = pnand %p496_p12, %p493_p11 }
  0x83   :  { %501 = shalt.err (!%p498_p13)
}
  0x84   :  { %313 = dma.vmem_to_hbm [thread:$0]  %s311_s13, 128, %s777_s6, [#allocation12]  }
  0x85   :  { %506 = dma.done.wait [#allocation4], 256  }
  0x86   :  { %507 = vsyncadd [#allocation4], 4294967040 }
  0x87   :  { %508 = dma.done.wait [#allocation9], 512  }
  0x88   :  { %509 = vsyncadd [#allocation9], 4294966784 }
  0x89   :  { %510 = dma.done.wait [#allocation12], 384  }
  0x8a   :  { %511 = vsyncadd [#allocation12], 4294966912 }
  0x8b   :  { %329 = vsyncpa [#allocation3], 1 }
  0x8c   :  { %330 = vsyncpa [#allocation6], 1 }
  0x8d   :  { %331 = vsyncpa [#allocation4], 1 }
  0x8e   :  { %332 = vsyncpa [#allocation9], 1 }
  0x8f   :  { %333 = vsyncpa [#allocation12], 1 }

</bundles_post_ra>
